<compile_context>
chip_gen: v7x
topology: tpu7x:2x2x1
jax: 0.10.0
libtpu: 0.0.40
codegen_flags: <defaults>
</compile_context>

<pallas_src>
import jax
import jax.numpy as jnp
from jax import lax
from jax.experimental import pallas as pl
from jax.experimental.pallas import tpu as pltpu

_H = _W = 15
_K = _H * _W  # 225 pixels per image


def _mpcnn_kernel(x_ref, w_ref, b_ref, o_ref):
    # x_ref: (TB, 225) VMEM tile of flattened images (streamed, double-buffered)
    # w_ref: (225, 1)  VMEM folded weight vector (resident across the grid)
    # b_ref: (1, 1)    SMEM folded scalar bias
    # o_ref: (TB, 1)   output tile
    o_ref[...] = (
        jnp.dot(x_ref[...], w_ref[...], preferred_element_type=jnp.float32)
        + b_ref[0, 0]
    )


def _fold_params(conv_w, conv_b, lin_w, lin_b):
    """Fold Conv2d(1,64,k=3,s=3,p=1) + Linear(1600,1) into (225,1) weights + scalar bias."""
    wc = conv_w.reshape(64, 3, 3).astype(jnp.float32)   # [c, kh, kw]
    w2 = lin_w.reshape(64, 5, 5).astype(jnp.float32)    # [c, oh, ow] (torch flatten order c*25+oh*5+ow)
    # Weight of padded-image pixel (oh*3+kh, ow*3+kw) = sum_c w2[c,oh,ow] * wc[c,kh,kw]
    wpad = jnp.einsum("cij,ckl->ikjl", w2, wc).reshape(15, 15)
    # Original pixel (h,w) sits at padded pixel (h+1,w+1); padded rows/cols 15,16 are
    # never visited by the 5 stride-3 windows, so original row/col 14 gets weight 0.
    wimg = jnp.zeros((_H, _W), jnp.float32).at[:14, :14].set(wpad[1:15, 1:15])
    bias = jnp.einsum("cij,c->", w2, conv_b.astype(jnp.float32)) + lin_b.astype(jnp.float32)[0]
    return wimg.reshape(_K, 1), bias.reshape(1, 1)


def minutiae_presence_cnn(x, conv_w, conv_b, lin_w, lin_b, *, tb=4096):
    N = x.shape[0]
    assert x.shape == (N, 1, _H, _W), "classifier expects a 5x5 conv map (15x15 input)"

    wvec, bias = _fold_params(conv_w, conv_b, lin_w, lin_b)

    # Free (contiguous) flatten — no im2col / patches materialization.
    x_flat = x.reshape(N, _K).astype(jnp.float32)

    # Batch tiling: sublane-aligned tiles; ragged tails handled by Pallas
    # boundary blocks (no host-side copy of x just to pad the batch).
    if N < 8:  # degenerate tiny-batch case only (pads at most 7 rows)
        x_flat = jnp.pad(x_flat, ((0, 8 - N), (0, 0)))
        n_rows = 8
    else:
        n_rows = N
    tb_eff = min(tb, (n_rows // 8) * 8)          # multiple of 8 sublanes, <= n_rows
    grid = (pl.cdiv(n_rows, tb_eff),)

    out = pl.pallas_call(
        _mpcnn_kernel,
        out_shape=jax.ShapeDtypeStruct((n_rows, 1), jnp.float32),
        grid=grid,
        in_specs=[
            pl.BlockSpec((tb_eff, _K), lambda i: (i, 0)),          # x tile (streamed, pipelined)
            pl.BlockSpec((_K, 1), lambda i: (0, 0)),               # folded weights (resident)
            pl.BlockSpec(memory_space=pltpu.MemorySpace.SMEM),     # scalar bias in SMEM
        ],
        out_specs=pl.BlockSpec((tb_eff, 1), lambda i: (i, 0)),
        compiler_params=pltpu.CompilerParams(
            dimension_semantics=("parallel",),   # shard batch tiles across cores (v7x megacore)
        ),
    )(x_flat, wvec, bias)

    return out[:N, 0].squeeze()  # matches torch `.squeeze()`: (N,) for N > 1, () for N == 1


def _reference(x, conv_w, conv_b, lin_w, lin_b):
    conv = lax.conv_general_dilated(
        x, conv_w, window_strides=(3, 3), padding=((1, 1), (1, 1)),
        dimension_numbers=("NCHW", "OIHW", "NCHW"))
    conv = conv + conv_b.reshape(1, 64, 1, 1)
    flat = conv.reshape(x.shape[0], -1)  # PyTorch flatten order (C, H, W)
    return (flat @ lin_w.T + lin_b).squeeze()


if __name__ == "__main__":
    key = jax.random.PRNGKey(0)
    k1, k2, k3, k4, k5, k6 = jax.random.split(key, 6)

    # Deterministic synthetic parameters (shapes from the module's __init__).
    conv_w = jax.random.normal(k1, (64, 1, 3, 3), jnp.float32) * 0.1
    conv_b = jax.random.normal(k2, (64,), jnp.float32) * 0.1
    lin_w = jax.random.normal(k3, (1, 64 * 5 * 5), jnp.float32) * 0.02
    lin_b = jax.random.normal(k4, (1,), jnp.float32) * 0.02

    # Input: 15x15 single-channel images -> conv output 5x5, matching Linear(64*5*5, 1).
    x = jax.random.normal(k5, (2, 1, 15, 15), jnp.float32)

    out = jax.block_until_ready(minutiae_presence_cnn(x, conv_w, conv_b, lin_w, lin_b))
    ref = jax.block_until_ready(_reference(x, conv_w, conv_b, lin_w, lin_b))
    assert out.shape == ref.shape == (2,), (out.shape, ref.shape)
    assert jnp.allclose(out, ref, atol=1e-4, rtol=1e-4), (out, ref)

    # Exercise the ragged (non-multiple-of-tile) batch path with boundary blocks.
    x2 = jax.random.normal(k6, (37, 1, 15, 15), jnp.float32)
    out2 = jax.block_until_ready(minutiae_presence_cnn(x2, conv_w, conv_b, lin_w, lin_b))
    ref2 = jax.block_until_ready(_reference(x2, conv_w, conv_b, lin_w, lin_b))
    assert out2.shape == ref2.shape == (37,), (out2.shape, ref2.shape)
    assert jnp.allclose(out2, ref2, atol=1e-4, rtol=1e-4), (out2, ref2)

    print("KERNEL_OK")
</pallas_src>

<mosaic_0001>
module attributes {stable_mosaic.version = 11 : i64} {
  func.func @_mpcnn_kernel(%arg0: i32, %arg1: memref<8x225xf32, #tpu.memory_space<vmem>>, %arg2: memref<225x1xf32, #tpu.memory_space<vmem>>, %arg3: memref<1x1xf32, #tpu.memory_space<smem>>, %arg4: memref<8x1xf32, #tpu.memory_space<vmem>>) attributes {dimension_semantics = [#tpu.dimension_semantics<parallel>], iteration_bounds = array<i64: 1>, scalar_prefetch = 0 : i64, scratch_operands = 0 : i64, tpu.core_type = #tpu.core_type<tc>, window_params = [{transform_indices = @transform_0, window_bounds = array<i64: 8, 225>}, {pipeline_mode = #tpu.pipeline_mode<synchronous>, transform_indices = @transform_1, window_bounds = array<i64: 225, 1>}, {transform_indices = @transform_2, window_bounds = array<i64: 1, 1>}, {transform_indices = @transform_3, window_bounds = array<i64: 8, 1>}]} {
    %c0 = arith.constant 0 : index
    %c0_0 = arith.constant 0 : index
    %0 = vector.load %arg1[%c0, %c0_0] : memref<8x225xf32, #tpu.memory_space<vmem>>, vector<8x225xf32>
    %c0_1 = arith.constant 0 : index
    %c0_2 = arith.constant 0 : index
    %1 = vector.load %arg2[%c0_1, %c0_2] : memref<225x1xf32, #tpu.memory_space<vmem>>, vector<225x1xf32>
    %cst = arith.constant dense<0.000000e+00> : vector<8x1xf32>
    %2 = tpu.matmul %0, %1, %cst {dimension_numbers = #tpu.dot_dimension_numbers<[1], [0], [0], [1], [0, 0, 1, 1], [], []>} : vector<8x225xf32>, vector<225x1xf32>, vector<8x1xf32> -> vector<8x1xf32>
    %c0_3 = arith.constant 0 : index
    %c0_4 = arith.constant 0 : index
    %3 = memref.load %arg3[%c0_3, %c0_4] : memref<1x1xf32, #tpu.memory_space<smem>>
    %4 = vector.broadcast %3 : f32 to vector<8x1xf32>
    %5 = arith.addf %2, %4 : vector<8x1xf32>
    %c0_5 = arith.constant 0 : index
    %c0_6 = arith.constant 0 : index
    %6 = vector.load %arg4[%c0_5, %c0_6] : memref<8x1xf32, #tpu.memory_space<vmem>>, vector<8x1xf32>
    tpu.vector_store %arg4[%c0_5, %c0_6], %5 {strides = array<i32>} : memref<8x1xf32, #tpu.memory_space<vmem>>, vector<8x1xf32>,
    return
  }
  func.func @transform_0(%arg0: i32) -> (i32, i32) {
    %c0_i32 = arith.constant 0 : i32
    %c0_i32_0 = arith.constant 0 : i32
    return %arg0, %c0_i32 : i32, i32
  }
  func.func @transform_1(%arg0: i32) -> (i32, i32) {
    %c0_i32 = arith.constant 0 : i32
    %c0_i32_0 = arith.constant 0 : i32
    %c0_i32_1 = arith.constant 0 : i32
    return %c0_i32, %c0_i32_0 : i32, i32
  }
  func.func @transform_2(%arg0: i32) -> (i32, i32) {
    %c0_i32 = arith.constant 0 : i32
    %c0_i32_0 = arith.constant 0 : i32
    %c0_i32_1 = arith.constant 0 : i32
    return %c0_i32, %c0_i32_0 : i32, i32
  }
  func.func @transform_3(%arg0: i32) -> (i32, i32) {
    %c0_i32 = arith.constant 0 : i32
    %c0_i32_0 = arith.constant 0 : i32
    return %arg0, %c0_i32 : i32, i32
  }
}

</mosaic_0001>

<bundles_post_ra>
// kernel: tpu_custom_call.1
= control target key start
LH: loop header
LB: loop body
LE: loop exit
PB: predicated region body
PF: predicated region fallthrough
CT: control target
= control target key end

     0   :  { %v178_v0 = vmov 0.0|0.0   ;;  %vm48_vm0 = vcmask 793600   ;;  %v179_v44 = vmov 0.0   ;;  %vm52_vm1 = vcmask 1040384   ;;  %s313_s1 = inlined_call_operand.vmem [shape: f32[225,1], index: 1, kind: input, shape index: {}]   ;;  %s314_s0 = inlined_call_operand.vmem [shape: f32[8,225], index: 0, kind: input, shape index: {}]   ;;  %s315_s2 = inlined_call_operand.<no memory space> [shape: f32[1,1], index: 2, kind: input, shape index: {}]   ;;  %s316_s3 = inlined_call_operand.vmem [shape: f32[8,1], index: 3, kind: output, shape index: {}]  }
   0x1   :  { %134 = vmatprep.subr.bf16.mxu0 %v178_v0  ;;  %v17_v1 = vld [vmem:[%s313_s1] sm:$0xff]  ;;  %v18_v2 = vld [vmem:[%s313_s1 + $0x8] sm:$0xff]  ;;  %v19_v3 = vld [vmem:[%s313_s1 + $0x10] sm:$0xff]  ;;  %v47_v47 = vstv %s315_s2  ;;  %vm126_vm2 = vcmask 7168  }
   0x2   :  { %v135_v4 = vpack.c.bf16 %v18_v2, %v17_v1  ;;  %v20_v5 = vld [vmem:[%s313_s1 + $0x18] sm:$0xff]  ;;  %v21_v7 = vld [vmem:[%s313_s1 + $0x20] sm:$0xff]  ;;  %v22_v8 = vld [vmem:[%s313_s1 + $0x28] sm:$0xff] }
   0x3   :  { %v138_v6 = vpack.c.bf16 %v20_v5, %v19_v3  ;;  %v141_v9 = vpack.c.bf16 %v22_v8, %v21_v7  ;;  %v23_v10 = vld [vmem:[%s313_s1 + $0x30] sm:$0xff]  ;;  %v24_v11 = vld [vmem:[%s313_s1 + $0x38] sm:$0xff]  ;;  %v16_v12 = vld [vmem:[%s314_s0 + $0x8] sm:$0xff] }
   0x4   :  { %136 = vmatpush1.bf16.msra.mxu0 %v135_v4  ;;  %133 = vmatprep.mubr.msk.f32.mxu0 %vm48_vm0, %v16_v12  ;;  %v144_v13 = vpack.c.bf16 %v24_v11, %v23_v10  ;;  %v25_v14 = vld [vmem:[%s313_s1 + $0x40] sm:$0xff]  ;;  %v26_v15 = vld [vmem:[%s313_s1 + $0x48] sm:$0xff]  ;;  %v27_v17 = vld [vmem:[%s313_s1 + $0x50] sm:$0xff] }
   0x5   :  { %137 = vmatprep.subr.bf16.mxu0 %v178_v0  ;;  %v147_v16 = vpack.c.bf16 %v26_v15, %v25_v14  ;;  %v28_v18 = vld [vmem:[%s313_s1 + $0x58] sm:$0xff]  ;;  %v29_v20 = vld [vmem:[%s313_s1 + $0x60] sm:$0xff]  ;;  %v30_v21 = vld [vmem:[%s313_s1 + $0x68] sm:$0xff] }
   0x6   :  { %v150_v19 = vpack.c.bf16 %v28_v18, %v27_v17  ;;  %v153_v22 = vpack.c.bf16 %v30_v21, %v29_v20  ;;  %v31_v23 = vld [vmem:[%s313_s1 + $0x70] sm:$0xff]  ;;  %v32_v24 = vld [vmem:[%s313_s1 + $0x78] sm:$0xff]  ;;  %v33_v26 = vld [vmem:[%s313_s1 + $0x80] sm:$0xff] }
   0x7   :  { %v156_v25 = vpack.c.bf16 %v32_v24, %v31_v23  ;;  %v34_v27 = vld [vmem:[%s313_s1 + $0x88] sm:$0xff]  ;;  %v35_v29 = vld [vmem:[%s313_s1 + $0x90] sm:$0xff]  ;;  %v36_v30 = vld [vmem:[%s313_s1 + $0x98] sm:$0xff] }
   0x8   :  { %139 = vmatpush1.bf16.msra.mxu0 %v138_v6  ;;  %v159_v28 = vpack.c.bf16 %v34_v27, %v33_v26  ;;  %v162_v31 = vpack.c.bf16 %v36_v30, %v35_v29  ;;  %v37_v32 = vld [vmem:[%s313_s1 + $0xa0] sm:$0xff]  ;;  %v38_v33 = vld [vmem:[%s313_s1 + $0xa8] sm:$0xff]  ;;  %v39_v35 = vld [vmem:[%s313_s1 + $0xb0] sm:$0xff] }
   0x9   :  { %140 = vmatprep.subr.bf16.mxu0 %v178_v0  ;;  %v165_v34 = vpack.c.bf16 %v38_v33, %v37_v32  ;;  %v40_v36 = vld [vmem:[%s313_s1 + $0xb8] sm:$0xff]  ;;  %v41_v38 = vld [vmem:[%s313_s1 + $0xc0] sm:$0xff]  ;;  %v42_v39 = vld [vmem:[%s313_s1 + $0xc8] sm:$0xff] }
   0xa   :  { %v168_v37 = vpack.c.bf16 %v40_v36, %v39_v35  ;;  %v171_v40 = vpack.c.bf16 %v42_v39, %v41_v38  ;;  %v43_v41 = vld [vmem:[%s313_s1 + $0xd0] sm:$0xff]  ;;  %v44_v42 = vld [vmem:[%s313_s1 + $0xd8] sm:$0xff]  ;;  %v45_v45 = vld [vmem:[%s313_s1 + $0xe0] sm:$0x1] }
   0xb   :  { %v174_v43 = vpack.c.bf16 %v44_v42, %v43_v41  ;;  %v15_v46 = vld [vmem:[%s314_s0] sm:$0xff] }
   0xc   :  { %142 = vmatpush1.bf16.msra.mxu0 %v141_v9 }
   0xd   :  { %143 = vmatprep.subr.bf16.mxu0 %v178_v0 }
  0x10   :  { %145 = vmatpush1.bf16.msra.mxu0 %v144_v13 }
  0x11   :  { %146 = vmatprep.subr.bf16.mxu0 %v178_v0 }
  0x14   :  { %148 = vmatpush1.bf16.msra.mxu0 %v147_v16 }
  0x15   :  { %149 = vmatprep.subr.bf16.mxu0 %v178_v0 }
  0x18   :  { %151 = vmatpush1.bf16.msra.mxu0 %v150_v19 }
  0x19   :  { %152 = vmatprep.subr.bf16.mxu0 %v178_v0 }
  0x1c   :  { %154 = vmatpush1.bf16.msra.mxu0 %v153_v22 }
  0x1d   :  { %155 = vmatprep.subr.bf16.mxu0 %v178_v0 }
  0x20   :  { %157 = vmatpush1.bf16.msra.mxu0 %v156_v25 }
  0x21   :  { %158 = vmatprep.subr.bf16.mxu0 %v178_v0 }
  0x24   :  { %160 = vmatpush1.bf16.msra.mxu0 %v159_v28 }
  0x25   :  { %161 = vmatprep.subr.bf16.mxu0 %v178_v0 }
  0x28   :  { %163 = vmatpush1.bf16.msra.mxu0 %v162_v31 }
  0x29   :  { %164 = vmatprep.subr.bf16.mxu0 %v178_v0 }
  0x2c   :  { %166 = vmatpush1.bf16.msra.mxu0 %v165_v34 }
  0x2d   :  { %167 = vmatprep.subr.bf16.mxu0 %v178_v0 }
  0x30   :  { %169 = vmatpush1.bf16.msra.mxu0 %v168_v37 }
  0x31   :  { %170 = vmatprep.subr.bf16.mxu0 %v178_v0 }
  0x34   :  { %172 = vmatpush1.bf16.msra.mxu0 %v171_v40 }
  0x35   :  { %173 = vmatprep.subr.bf16.mxu0 %v178_v0 }
  0x38   :  { %175 = vmatpush1.bf16.msra.mxu0 %v174_v43 }
  0x39   :  { %112 = vmatprep.subr.mxu0 %v179_v44 }
  0x3c   :  { %132 = vmatpush1.msk.msra.mxu0 %vm52_vm1, %v45_v45 }
  0x3d   :  { %121 = vmatmul.mubr.f32.vlgmr.msra.gmra.mrb[0].mxu0 %v15_v46 }
 0x110   :  { %v122_v48 = vpop.f32.mrb[0].mxu0 }
 0x111   :  { %v123_v49 = vadd.f32 %v122_v48, %v47_v47  ;;  %v124_v50 = vpop.f32.mrb[1].mxu0 }
 0x113   :  { %127 = vst.msk [vmem:[%s316_s3] sm:$0xff] %vm126_vm2, %v123_v49 }

</bundles_post_ra>
